<compile_context>
chip_gen: v6e
topology: v6e:2x2x1
jax: 0.10.0
libtpu: 0.0.40
codegen_flags: <defaults>
</compile_context>

<pallas_src>
import functools

import numpy as np
import jax
import jax.numpy as jnp
from jax import lax
from jax.experimental import pallas as pl
from jax.experimental.pallas import tpu as pltpu

_MIB = 1 << 20


def _round_up(x, m):
    return (x + m - 1) // m * m


# ------------------------------------------------------------------ kernel --
def _projector_kernel(x_ref, w1_ref, b1_ref, w2_ref, b2_ref, g2_ref, be2_ref,
                      o_ref, *, inv_h, ew_dtype):
    """One row tile: LN1 -> Linear -> GELU -> Linear -> LN2 (0.1 folded in)."""
    eps = 1e-5
    x = x_ref[...].astype(jnp.float32)                        # (TM, Din)

    # Input LayerNorm.  gamma/beta are folded into W1/b1 on the host, so the
    # kernel only standardizes (saves two full-width VPU ops per element).
    mu = jnp.mean(x, axis=-1, keepdims=True)
    xc = x - mu
    var = jnp.mean(xc * xc, axis=-1, keepdims=True)
    z = xc * lax.rsqrt(var + eps)                             # (TM, Din) f32

    # Linear 1: bf16 operands on the MXU, f32 accumulation.
    h = jnp.dot(z.astype(w1_ref.dtype), w1_ref[...],
                preferred_element_type=jnp.float32) + b1_ref[...]   # (TM, H2)

    # GELU (exact erf form).  erf runs on the EUP in f32 (its own bundle slot);
    # the combining multiplies run in ew_dtype (bf16 VALU on v6e/v7x, f32 v5e).
    erf_t = lax.erf(h * 0.7071067811865476)
    g = (h.astype(ew_dtype) * 0.5) * (1.0 + erf_t).astype(ew_dtype)
    # Dropout(0.1): identity in eval mode.
    # TODO(synk): training-mode dropout (RNG mask) is not implemented.

    # Linear 2 into the lane-padded width Hp (padded W2 cols / b2 lanes are
    # zero, so padded y columns are exactly 0).
    y = jnp.dot(g.astype(w2_ref.dtype), w2_ref[...],
                preferred_element_type=jnp.float32) + b2_ref[...]   # (TM, Hp)

    # Output LayerNorm over the TRUE width H.  Padded columns contribute exact
    # zeros to both sums, so no lane mask is needed (E[y^2] - mu^2 form).
    mu2 = jnp.sum(y, axis=-1, keepdims=True) * inv_h
    ex2 = jnp.sum(y * y, axis=-1, keepdims=True) * inv_h
    var2 = jnp.maximum(ex2 - mu2 * mu2, 0.0)
    # The final *0.1 is folded into g2/be2 on the host.  Padded g2/be2 lanes
    # are zero, so padded output lanes stay exactly zero and slice off cleanly.
    o_ref[...] = ((y - mu2) * lax.rsqrt(var2 + eps) * g2_ref[...]
                  + be2_ref[...]).astype(o_ref.dtype)


# ----------------------------------------------------------- chip budgeting --
_CHIP_CFG = {
    # vmem_cap: max scoped VMEM we request (headroom under physical);
    # max_rows: row-tile cap; bf16 elementwise only where the VPU has bf16.
    "v5e":     dict(vmem_cap=100 * _MIB, max_rows=512, ew_dtype=jnp.float32,  two_cores=False),
    "v6e":     dict(vmem_cap=100 * _MIB, max_rows=512, ew_dtype=jnp.bfloat16, two_cores=False),
    "v7x":     dict(vmem_cap=56 * _MIB,  max_rows=128, ew_dtype=jnp.bfloat16, two_cores=True),
    "unknown": dict(vmem_cap=56 * _MIB,  max_rows=256, ew_dtype=jnp.float32,  two_cores=False),
}


def _chip_kind():
    try:
        kind = jax.devices()[0].device_kind.lower()
    except Exception:
        return "unknown"
    if "v5e" in kind or "v5 lite" in kind or "v5lite" in kind:
        return "v5e"
    if "v6" in kind or "trillium" in kind:
        return "v6e"
    if "v7" in kind:
        return "v7x"
    return "unknown"


def _resident_bytes(Din, H2, Hp, w_bytes):
    # Single-buffered resident weights + bias / LN vectors.
    return (Din * H2 + H2 * Hp) * w_bytes + (H2 + 3 * Hp) * 4


def _per_row_bytes(Din, H2, Hp, x_bytes, out_bytes):
    return (2 * Din * x_bytes          # double-buffered input tile
            + 2 * Hp * out_bytes       # double-buffered output tile
            + (Din + H2 + Hp) * 4      # live f32 intermediates (z, h, y)
            + H2 * 2)                  # bf16 GELU output feeding matmul 2


def _pick_tile_rows(R, Din, H2, Hp, cfg, x_bytes, out_bytes, w_bytes):
    budget = int(cfg["vmem_cap"] * 0.85) - _resident_bytes(Din, H2, Hp, w_bytes)
    per_row = _per_row_bytes(Din, H2, Hp, x_bytes, out_bytes)
    tm = budget // per_row if budget > 0 else 0
    # TODO(synk): if the resident bf16 weights alone exceed the VMEM cap
    # (LM-sized H on v7x), switch to a (row_tile, k_chunk) grid that streams
    # W1/W2 chunks and accumulates into a (TM, Hp) f32 scratch with pl.when.
    tm = min(tm, cfg["max_rows"], _round_up(R, 8))
    tm = (tm // 128) * 128 if tm >= 128 else max(8, (tm // 8) * 8)
    if cfg["two_cores"]:
        # Give the 'parallel' row axis >= 2 steps so both TensorCores get work.
        while tm > 8 and pl.cdiv(R, tm) < 2:
            tm = max(8, _round_up(tm // 2, 8))
    return tm


def _vmem_limit(TM, Din, H2, Hp, cfg, x_bytes, out_bytes, w_bytes):
    need = (_resident_bytes(Din, H2, Hp, w_bytes)
            + TM * _per_row_bytes(Din, H2, Hp, x_bytes, out_bytes))
    limit = int(need * 1.5) + 4 * _MIB          # headroom for compiler scratch
    return int(max(32 * _MIB, min(cfg["vmem_cap"], limit)))


# -------------------------------------------------------------- pallas_call --
def _build_call(kernel, Rp, TM, Din, H2, Hp, out_dtype, vmem_limit, cost,
                single_buffer_weights):
    def const_spec(shape):
        # Constant index_map -> VMEM-resident across the grid; single-buffer it
        # (Buffered(1)) so the weight slabs don't pay the default double buffer.
        if single_buffer_weights:
            return pl.BlockSpec(shape, lambda i: (0, 0),
                                pipeline_mode=pl.Buffered(1))
        return pl.BlockSpec(shape, lambda i: (0, 0))

    return pl.pallas_call(
        kernel,
        out_shape=jax.ShapeDtypeStruct((Rp, Hp), out_dtype),
        grid=(Rp // TM,),
        in_specs=[
            pl.BlockSpec((TM, Din), lambda i: (i, 0)),   # x row tile (pipelined)
            const_spec((Din, H2)),                       # W1' (bf16, LN1 folded)
            const_spec((1, H2)),                         # b1' (LN1 beta folded)
            const_spec((H2, Hp)),                        # W2  (bf16, lane-padded)
            const_spec((1, Hp)),                         # b2  (padded)
            const_spec((1, Hp)),                         # 0.1*g2  (padded)
            const_spec((1, Hp)),                         # 0.1*be2 (padded)
        ],
        out_specs=pl.BlockSpec((TM, Hp), lambda i: (i, 0)),
        compiler_params=pltpu.CompilerParams(
            dimension_semantics=("parallel",),           # megacore on v7x
            vmem_limit_bytes=vmem_limit),
        cost_estimate=cost,
    )


def improved_modality_projector(audio_features, params, *,
                                matmul_dtype=jnp.bfloat16, out_dtype=None,
                                block_rows=None):
    """audio_features: (B, T, Din).  Returns (B, T, H) in out_dtype (default input dtype)."""
    B, T, Din = audio_features.shape
    H2 = params["w1"].shape[1]
    H = params["w2"].shape[1]
    R = B * T
    out_dtype = audio_features.dtype if out_dtype is None else out_dtype

    cfg = dict(_CHIP_CFG[_chip_kind()])
    if block_rows is not None:
        cfg["max_rows"] = int(block_rows)

    w_bytes = np.dtype(matmul_dtype).itemsize
    x_bytes = np.dtype(audio_features.dtype).itemsize
    o_bytes = np.dtype(out_dtype).itemsize

    Hp = _round_up(H, 128)                   # lane-dense, unmasked output stores
    TM = _pick_tile_rows(R, Din, H2, Hp, cfg, x_bytes, o_bytes, w_bytes)
    Rp = _round_up(R, TM)
    vmem_limit = _vmem_limit(TM, Din, H2, Hp, cfg, x_bytes, o_bytes, w_bytes)

    x2d = audio_features.reshape(R, Din)
    if Rp != R:
        x2d = jnp.pad(x2d, ((0, Rp - R), (0, 0)))

    # ---- one-time host-side parameter folding ----
    f32 = jnp.float32
    w1f = params["w1"].astype(f32)
    g1 = params["ln1_gamma"].astype(f32)
    be1 = params["ln1_beta"].astype(f32)
    w1 = (g1[:, None] * w1f).astype(matmul_dtype)                    # LN1 gamma folded
    b1 = (params["b1"].astype(f32) + be1 @ w1f).reshape(1, H2)       # LN1 beta folded
    # NOTE: padded lanes of W2/b2/g2/be2 MUST stay exactly zero — the output
    # LayerNorm statistics rely on padded y columns being exact zeros.
    w2 = jnp.pad(params["w2"].astype(f32), ((0, 0), (0, Hp - H))).astype(matmul_dtype)
    b2 = jnp.pad(params["b2"].astype(f32), (0, Hp - H)).reshape(1, Hp)
    g2 = jnp.pad(0.1 * params["ln2_gamma"].astype(f32), (0, Hp - H)).reshape(1, Hp)
    be2 = jnp.pad(0.1 * params["ln2_beta"].astype(f32), (0, Hp - H)).reshape(1, Hp)

    kernel = functools.partial(_projector_kernel, inv_h=1.0 / H,
                               ew_dtype=cfg["ew_dtype"])

    cost = pl.CostEstimate(
        flops=2 * Rp * (Din * H2 + H2 * Hp),
        transcendentals=Rp * H2,
        bytes_accessed=(Rp * Din * x_bytes + Rp * Hp * o_bytes
                        + (Din * H2 + H2 * Hp) * w_bytes
                        + 4 * (H2 + 3 * Hp)))

    args = (x2d, w1, b1, w2, b2, g2, be2)
    try:
        call = _build_call(kernel, Rp, TM, Din, H2, Hp, out_dtype,
                           vmem_limit, cost, single_buffer_weights=True)
        out2d = jax.block_until_ready(call(*args))
    except Exception:
        # Fallback for Pallas builds that reject BlockSpec(pipeline_mode=...).
        call = _build_call(kernel, Rp, TM, Din, H2, Hp, out_dtype,
                           vmem_limit, cost, single_buffer_weights=False)
        out2d = jax.block_until_ready(call(*args))

    return out2d[:R, :H].reshape(B, T, H)


# --------------------------------------------------------------- test setup --
def _xavier_uniform(key, fan_in, fan_out, dtype=jnp.float32):
    """Matches nn.init.xavier_uniform_ on a torch Linear weight (fan_out, fan_in),
    returned transposed (fan_in, fan_out) for x @ W."""
    bound = jnp.sqrt(6.0 / (fan_in + fan_out)).astype(dtype)
    return jax.random.uniform(key, (fan_in, fan_out), dtype=dtype,
                              minval=-bound, maxval=bound)


def init_params(key, audio_hidden_dim, lm_hidden_dim):
    k1, k2 = jax.random.split(key)
    H2 = lm_hidden_dim * 2
    return {
        "ln1_gamma": jnp.ones((audio_hidden_dim,), jnp.float32),
        "ln1_beta": jnp.zeros((audio_hidden_dim,), jnp.float32),
        "w1": _xavier_uniform(k1, audio_hidden_dim, H2),
        "b1": jnp.zeros((H2,), jnp.float32),
        "w2": _xavier_uniform(k2, H2, lm_hidden_dim),
        "b2": jnp.zeros((lm_hidden_dim,), jnp.float32),
        "ln2_gamma": jnp.ones((lm_hidden_dim,), jnp.float32),
        "ln2_beta": jnp.zeros((lm_hidden_dim,), jnp.float32),
    }


def _reference(audio_features, params):
    """Pure-JAX f32 reference for correctness check."""
    eps = 1e-5
    x = audio_features.astype(jnp.float32)
    mu = jnp.mean(x, -1, keepdims=True)
    var = jnp.mean((x - mu) ** 2, -1, keepdims=True)
    xn = (x - mu) * lax.rsqrt(var + eps) * params["ln1_gamma"] + params["ln1_beta"]
    h = xn @ params["w1"] + params["b1"]
    h = 0.5 * h * (1.0 + lax.erf(h / jnp.sqrt(2.0)))
    y = h @ params["w2"] + params["b2"]
    mu2 = jnp.mean(y, -1, keepdims=True)
    var2 = jnp.mean((y - mu2) ** 2, -1, keepdims=True)
    yn = (y - mu2) * lax.rsqrt(var2 + eps) * params["ln2_gamma"] + params["ln2_beta"]
    return yn * 0.1


if __name__ == "__main__":
    # Small deterministic config (target_length is unused by forward()).
    batch, seq = 2, 8
    audio_hidden_dim = 32
    lm_hidden_dim = 32

    key = jax.random.PRNGKey(0)
    k_param, k_input = jax.random.split(key)

    params = init_params(k_param, audio_hidden_dim, lm_hidden_dim)
    audio_features = jax.random.normal(
        k_input, (batch, seq, audio_hidden_dim), dtype=jnp.float32)

    out = improved_modality_projector(audio_features, params)
    out = jax.block_until_ready(out)

    ref = _reference(audio_features, params)
    assert out.shape == (batch, seq, lm_hidden_dim)
    # bf16 MXU operands (and bf16 GELU combine on v6e/v7x) with f32
    # accumulation -> relaxed tolerance vs the f32 reference.
    assert jnp.allclose(out, ref, atol=2e-2, rtol=2e-2), "mismatch vs reference"

    print("KERNEL_OK")
</pallas_src>

<mosaic_0001>
module attributes {stable_mosaic.version = 11 : i64} {
  func.func @_projector_kernel(%arg0: i32, %arg1: memref<16x32xf32, #tpu.memory_space<vmem>>, %arg2: memref<32x64xbf16, #tpu.memory_space<vmem>>, %arg3: memref<1x64xf32, #tpu.memory_space<vmem>>, %arg4: memref<64x128xbf16, #tpu.memory_space<vmem>>, %arg5: memref<1x128xf32, #tpu.memory_space<vmem>>, %arg6: memref<1x128xf32, #tpu.memory_space<vmem>>, %arg7: memref<1x128xf32, #tpu.memory_space<vmem>>, %arg8: memref<16x128xf32, #tpu.memory_space<vmem>>) attributes {dimension_semantics = [#tpu.dimension_semantics<parallel>], iteration_bounds = array<i64: 1>, scalar_prefetch = 0 : i64, scratch_operands = 0 : i64, tpu.core_type = #tpu.core_type<tc>, window_params = [{transform_indices = @transform_0, window_bounds = array<i64: 16, 32>}, {pipeline_mode = #tpu.pipeline_mode<synchronous>, transform_indices = @transform_1, window_bounds = array<i64: 32, 64>}, {pipeline_mode = #tpu.pipeline_mode<synchronous>, transform_indices = @transform_2, window_bounds = array<i64: 1, 64>}, {pipeline_mode = #tpu.pipeline_mode<synchronous>, transform_indices = @transform_3, window_bounds = array<i64: 64, 128>}, {pipeline_mode = #tpu.pipeline_mode<synchronous>, transform_indices = @transform_4, window_bounds = array<i64: 1, 128>}, {pipeline_mode = #tpu.pipeline_mode<synchronous>, transform_indices = @transform_5, window_bounds = array<i64: 1, 128>}, {pipeline_mode = #tpu.pipeline_mode<synchronous>, transform_indices = @transform_6, window_bounds = array<i64: 1, 128>}, {transform_indices = @transform_7, window_bounds = array<i64: 16, 128>}]} {
    %c0 = arith.constant 0 : index
    %c0_0 = arith.constant 0 : index
    %0 = vector.load %arg1[%c0, %c0_0] : memref<16x32xf32, #tpu.memory_space<vmem>>, vector<16x32xf32>
    %cst = arith.constant dense<0.000000e+00> : vector<16xf32>
    %1 = vector.multi_reduction <add>, %0, %cst [1] : vector<16x32xf32> to vector<16xf32>
    %2 = vector.shape_cast %1 : vector<16xf32> to vector<16x1xf32>
    %cst_1 = arith.constant 3.200000e+01 : f32
    %3 = vector.broadcast %cst_1 : f32 to vector<16x1xf32>
    %4 = arith.divf %2, %3 : vector<16x1xf32>
    %5 = vector.broadcast %4 : vector<16x1xf32> to vector<16x32xf32>
    %6 = arith.subf %0, %5 : vector<16x32xf32>
    %7 = arith.mulf %6, %6 : vector<16x32xf32>
    %cst_2 = arith.constant dense<0.000000e+00> : vector<16xf32>
    %8 = vector.multi_reduction <add>, %7, %cst_2 [1] : vector<16x32xf32> to vector<16xf32>
    %9 = vector.shape_cast %8 : vector<16xf32> to vector<16x1xf32>
    %cst_3 = arith.constant 3.200000e+01 : f32
    %10 = vector.broadcast %cst_3 : f32 to vector<16x1xf32>
    %11 = arith.divf %9, %10 : vector<16x1xf32>
    %cst_4 = arith.constant 9.99999974E-6 : f32
    %12 = vector.broadcast %cst_4 : f32 to vector<16x1xf32>
    %13 = arith.addf %11, %12 : vector<16x1xf32>
    %14 = math.rsqrt %13 : vector<16x1xf32>
    %15 = vector.broadcast %14 : vector<16x1xf32> to vector<16x32xf32>
    %16 = arith.mulf %6, %15 : vector<16x32xf32>
    %17 = arith.truncf %16 : vector<16x32xf32> to vector<16x32xbf16>
    %c0_5 = arith.constant 0 : index
    %c0_6 = arith.constant 0 : index
    %18 = vector.load %arg2[%c0_5, %c0_6] : memref<32x64xbf16, #tpu.memory_space<vmem>>, vector<32x64xbf16>
    %cst_7 = arith.constant dense<0.000000e+00> : vector<16x64xf32>
    %19 = tpu.matmul %17, %18, %cst_7 {dimension_numbers = #tpu.dot_dimension_numbers<[1], [0], [0], [1], [0, 0, 1, 1], [], []>} : vector<16x32xbf16>, vector<32x64xbf16>, vector<16x64xf32> -> vector<16x64xf32>
    %c0_8 = arith.constant 0 : index
    %c0_9 = arith.constant 0 : index
    %20 = vector.load %arg3[%c0_8, %c0_9] : memref<1x64xf32, #tpu.memory_space<vmem>>, vector<1x64xf32>
    %21 = vector.broadcast %20 : vector<1x64xf32> to vector<16x64xf32>
    %22 = arith.addf %19, %21 : vector<16x64xf32>
    %cst_10 = arith.constant 0.707106769 : f32
    %23 = vector.broadcast %cst_10 : f32 to vector<16x64xf32>
    %24 = arith.mulf %22, %23 : vector<16x64xf32>
    %25 = math.erf %24 : vector<16x64xf32>
    %cst_11 = arith.constant 5.000000e-01 : f32
    %26 = vector.broadcast %cst_11 : f32 to vector<16x64xf32>
    %27 = arith.mulf %22, %26 : vector<16x64xf32>
    %cst_12 = arith.constant 1.000000e+00 : f32
    %28 = vector.broadcast %cst_12 : f32 to vector<16x64xf32>
    %29 = arith.addf %28, %25 : vector<16x64xf32>
    %30 = arith.mulf %27, %29 : vector<16x64xf32>
    %31 = arith.truncf %30 : vector<16x64xf32> to vector<16x64xbf16>
    %c0_13 = arith.constant 0 : index
    %c0_14 = arith.constant 0 : index
    %32 = vector.load %arg4[%c0_13, %c0_14] : memref<64x128xbf16, #tpu.memory_space<vmem>>, vector<64x128xbf16>
    %cst_15 = arith.constant dense<0.000000e+00> : vector<16x128xf32>
    %33 = tpu.matmul %31, %32, %cst_15 {dimension_numbers = #tpu.dot_dimension_numbers<[1], [0], [0], [1], [0, 0, 1, 1], [], []>} : vector<16x64xbf16>, vector<64x128xbf16>, vector<16x128xf32> -> vector<16x128xf32>
    %c0_16 = arith.constant 0 : index
    %c0_17 = arith.constant 0 : index
    %34 = vector.load %arg5[%c0_16, %c0_17] : memref<1x128xf32, #tpu.memory_space<vmem>>, vector<1x128xf32>
    %35 = vector.broadcast %34 : vector<1x128xf32> to vector<16x128xf32>
    %36 = arith.addf %33, %35 : vector<16x128xf32>
    %cst_18 = arith.constant dense<0.000000e+00> : vector<16xf32>
    %37 = vector.multi_reduction <add>, %36, %cst_18 [1] : vector<16x128xf32> to vector<16xf32>
    %38 = vector.shape_cast %37 : vector<16xf32> to vector<16x1xf32>
    %cst_19 = arith.constant 3.125000e-02 : f32
    %39 = vector.broadcast %cst_19 : f32 to vector<16x1xf32>
    %40 = arith.mulf %38, %39 : vector<16x1xf32>
    %41 = arith.mulf %36, %36 : vector<16x128xf32>
    %cst_20 = arith.constant dense<0.000000e+00> : vector<16xf32>
    %42 = vector.multi_reduction <add>, %41, %cst_20 [1] : vector<16x128xf32> to vector<16xf32>
    %43 = vector.shape_cast %42 : vector<16xf32> to vector<16x1xf32>
    %cst_21 = arith.constant 3.125000e-02 : f32
    %44 = vector.broadcast %cst_21 : f32 to vector<16x1xf32>
    %45 = arith.mulf %43, %44 : vector<16x1xf32>
    %46 = arith.mulf %40, %40 : vector<16x1xf32>
    %47 = arith.subf %45, %46 : vector<16x1xf32>
    %cst_22 = arith.constant 0.000000e+00 : f32
    %48 = vector.broadcast %cst_22 : f32 to vector<16x1xf32>
    %49 = arith.maximumf %47, %48 : vector<16x1xf32>
    %50 = vector.broadcast %40 : vector<16x1xf32> to vector<16x128xf32>
    %51 = arith.subf %36, %50 : vector<16x128xf32>
    %cst_23 = arith.constant 9.99999974E-6 : f32
    %52 = vector.broadcast %cst_23 : f32 to vector<16x1xf32>
    %53 = arith.addf %49, %52 : vector<16x1xf32>
    %54 = math.rsqrt %53 : vector<16x1xf32>
    %55 = vector.broadcast %54 : vector<16x1xf32> to vector<16x128xf32>
    %56 = arith.mulf %51, %55 : vector<16x128xf32>
    %c0_24 = arith.constant 0 : index
    %c0_25 = arith.constant 0 : index
    %57 = vector.load %arg6[%c0_24, %c0_25] : memref<1x128xf32, #tpu.memory_space<vmem>>, vector<1x128xf32>
    %58 = vector.broadcast %57 : vector<1x128xf32> to vector<16x128xf32>
    %59 = arith.mulf %56, %58 : vector<16x128xf32>
    %c0_26 = arith.constant 0 : index
    %c0_27 = arith.constant 0 : index
    %60 = vector.load %arg7[%c0_26, %c0_27] : memref<1x128xf32, #tpu.memory_space<vmem>>, vector<1x128xf32>
    %61 = vector.broadcast %60 : vector<1x128xf32> to vector<16x128xf32>
    %62 = arith.addf %59, %61 : vector<16x128xf32>
    %c0_28 = arith.constant 0 : index
    %c0_29 = arith.constant 0 : index
    %63 = vector.load %arg8[%c0_28, %c0_29] : memref<16x128xf32, #tpu.memory_space<vmem>>, vector<16x128xf32>
    tpu.vector_store %arg8[%c0_28, %c0_29], %62 {strides = array<i32>} : memref<16x128xf32, #tpu.memory_space<vmem>>, vector<16x128xf32>,
    return
  }
  func.func @transform_0(%arg0: i32) -> (i32, i32) {
    %c0_i32 = arith.constant 0 : i32
    %c0_i32_0 = arith.constant 0 : i32
    return %arg0, %c0_i32 : i32, i32
  }
  func.func @transform_1(%arg0: i32) -> (i32, i32) {
    %c0_i32 = arith.constant 0 : i32
    %c0_i32_0 = arith.constant 0 : i32
    %c0_i32_1 = arith.constant 0 : i32
    return %c0_i32, %c0_i32_0 : i32, i32
  }
  func.func @transform_2(%arg0: i32) -> (i32, i32) {
    %c0_i32 = arith.constant 0 : i32
    %c0_i32_0 = arith.constant 0 : i32
    %c0_i32_1 = arith.constant 0 : i32
    return %c0_i32, %c0_i32_0 : i32, i32
  }
  func.func @transform_3(%arg0: i32) -> (i32, i32) {
    %c0_i32 = arith.constant 0 : i32
    %c0_i32_0 = arith.constant 0 : i32
    %c0_i32_1 = arith.constant 0 : i32
    return %c0_i32, %c0_i32_0 : i32, i32
  }
  func.func @transform_4(%arg0: i32) -> (i32, i32) {
    %c0_i32 = arith.constant 0 : i32
    %c0_i32_0 = arith.constant 0 : i32
    %c0_i32_1 = arith.constant 0 : i32
    return %c0_i32, %c0_i32_0 : i32, i32
  }
  func.func @transform_5(%arg0: i32) -> (i32, i32) {
    %c0_i32 = arith.constant 0 : i32
    %c0_i32_0 = arith.constant 0 : i32
    %c0_i32_1 = arith.constant 0 : i32
    return %c0_i32, %c0_i32_0 : i32, i32
  }
  func.func @transform_6(%arg0: i32) -> (i32, i32) {
    %c0_i32 = arith.constant 0 : i32
    %c0_i32_0 = arith.constant 0 : i32
    %c0_i32_1 = arith.constant 0 : i32
    return %c0_i32, %c0_i32_0 : i32, i32
  }
  func.func @transform_7(%arg0: i32) -> (i32, i32) {
    %c0_i32 = arith.constant 0 : i32
    %c0_i32_0 = arith.constant 0 : i32
    return %arg0, %c0_i32 : i32, i32
  }
}

module attributes {stable_mosaic.version = 11 : i64} {
  func.func @_projector_kernel(%arg0: i32, %arg1: memref<16x32xf32, #tpu.memory_space<vmem>>, %arg2: memref<32x64xbf16, #tpu.memory_space<vmem>>, %arg3: memref<1x64xf32, #tpu.memory_space<vmem>>, %arg4: memref<64x128xbf16, #tpu.memory_space<vmem>>, %arg5: memref<1x128xf32, #tpu.memory_space<vmem>>, %arg6: memref<1x128xf32, #tpu.memory_space<vmem>>, %arg7: memref<1x128xf32, #tpu.memory_space<vmem>>, %arg8: memref<16x128xf32, #tpu.memory_space<vmem>>) attributes {dimension_semantics = [#tpu.dimension_semantics<parallel>], iteration_bounds = array<i64: 1>, scalar_prefetch = 0 : i64, scratch_operands = 0 : i64, tpu.core_type = #tpu.core_type<tc>, window_params = [{transform_indices = @transform_0, window_bounds = array<i64: 16, 32>}, {pipeline_mode = #tpu.pipeline_mode<synchronous>, transform_indices = @transform_1, window_bounds = array<i64: 32, 64>}, {pipeline_mode = #tpu.pipeline_mode<synchronous>, transform_indices = @transform_2, window_bounds = array<i64: 1, 64>}, {pipeline_mode = #tpu.pipeline_mode<synchronous>, transform_indices = @transform_3, window_bounds = array<i64: 64, 128>}, {pipeline_mode = #tpu.pipeline_mode<synchronous>, transform_indices = @transform_4, window_bounds = array<i64: 1, 128>}, {pipeline_mode = #tpu.pipeline_mode<synchronous>, transform_indices = @transform_5, window_bounds = array<i64: 1, 128>}, {pipeline_mode = #tpu.pipeline_mode<synchronous>, transform_indices = @transform_6, window_bounds = array<i64: 1, 128>}, {transform_indices = @transform_7, window_bounds = array<i64: 16, 128>}]} {
    %c0 = arith.constant 0 : index
    %c0_0 = arith.constant 0 : index
    %0 = vector.load %arg1[%c0, %c0_0] : memref<16x32xf32, #tpu.memory_space<vmem>>, vector<16x32xf32>
    %cst = arith.constant dense<0.000000e+00> : vector<16xf32>
    %1 = vector.multi_reduction <add>, %0, %cst [1] : vector<16x32xf32> to vector<16xf32>
    %2 = vector.shape_cast %1 : vector<16xf32> to vector<16x1xf32>
    %cst_1 = arith.constant 3.200000e+01 : f32
    %3 = vector.broadcast %cst_1 : f32 to vector<16x1xf32>
    %4 = arith.divf %2, %3 : vector<16x1xf32>
    %5 = vector.broadcast %4 : vector<16x1xf32> to vector<16x32xf32>
    %6 = arith.subf %0, %5 : vector<16x32xf32>
    %7 = arith.mulf %6, %6 : vector<16x32xf32>
    %cst_2 = arith.constant dense<0.000000e+00> : vector<16xf32>
    %8 = vector.multi_reduction <add>, %7, %cst_2 [1] : vector<16x32xf32> to vector<16xf32>
    %9 = vector.shape_cast %8 : vector<16xf32> to vector<16x1xf32>
    %cst_3 = arith.constant 3.200000e+01 : f32
    %10 = vector.broadcast %cst_3 : f32 to vector<16x1xf32>
    %11 = arith.divf %9, %10 : vector<16x1xf32>
    %cst_4 = arith.constant 9.99999974E-6 : f32
    %12 = vector.broadcast %cst_4 : f32 to vector<16x1xf32>
    %13 = arith.addf %11, %12 : vector<16x1xf32>
    %14 = math.rsqrt %13 : vector<16x1xf32>
    %15 = vector.broadcast %14 : vector<16x1xf32> to vector<16x32xf32>
    %16 = arith.mulf %6, %15 : vector<16x32xf32>
    %17 = arith.truncf %16 : vector<16x32xf32> to vector<16x32xbf16>
    %c0_5 = arith.constant 0 : index
    %c0_6 = arith.constant 0 : index
    %18 = vector.load %arg2[%c0_5, %c0_6] : memref<32x64xbf16, #tpu.memory_space<vmem>>, vector<32x64xbf16>
    %cst_7 = arith.constant dense<0.000000e+00> : vector<16x64xf32>
    %19 = tpu.matmul %17, %18, %cst_7 {dimension_numbers = #tpu.dot_dimension_numbers<[1], [0], [0], [1], [0, 0, 1, 1], [], []>} : vector<16x32xbf16>, vector<32x64xbf16>, vector<16x64xf32> -> vector<16x64xf32>
    %c0_8 = arith.constant 0 : index
    %c0_9 = arith.constant 0 : index
    %20 = vector.load %arg3[%c0_8, %c0_9] : memref<1x64xf32, #tpu.memory_space<vmem>>, vector<1x64xf32>
    %21 = vector.broadcast %20 : vector<1x64xf32> to vector<16x64xf32>
    %22 = arith.addf %19, %21 : vector<16x64xf32>
    %cst_10 = arith.constant 0.707106769 : f32
    %23 = vector.broadcast %cst_10 : f32 to vector<16x64xf32>
    %24 = arith.mulf %22, %23 : vector<16x64xf32>
    %25 = math.erf %24 : vector<16x64xf32>
    %cst_11 = arith.constant 5.000000e-01 : f32
    %26 = vector.broadcast %cst_11 : f32 to vector<16x64xf32>
    %27 = arith.mulf %22, %26 : vector<16x64xf32>
    %cst_12 = arith.constant 1.000000e+00 : f32
    %28 = vector.broadcast %cst_12 : f32 to vector<16x64xf32>
    %29 = arith.addf %28, %25 : vector<16x64xf32>
    %30 = arith.mulf %27, %29 : vector<16x64xf32>
    %31 = arith.truncf %30 : vector<16x64xf32> to vector<16x64xbf16>
    %c0_13 = arith.constant 0 : index
    %c0_14 = arith.constant 0 : index
    %32 = vector.load %arg4[%c0_13, %c0_14] : memref<64x128xbf16, #tpu.memory_space<vmem>>, vector<64x128xbf16>
    %cst_15 = arith.constant dense<0.000000e+00> : vector<16x128xf32>
    %33 = tpu.matmul %31, %32, %cst_15 {dimension_numbers = #tpu.dot_dimension_numbers<[1], [0], [0], [1], [0, 0, 1, 1], [], []>} : vector<16x64xbf16>, vector<64x128xbf16>, vector<16x128xf32> -> vector<16x128xf32>
    %c0_16 = arith.constant 0 : index
    %c0_17 = arith.constant 0 : index
    %34 = vector.load %arg5[%c0_16, %c0_17] : memref<1x128xf32, #tpu.memory_space<vmem>>, vector<1x128xf32>
    %35 = vector.broadcast %34 : vector<1x128xf32> to vector<16x128xf32>
    %36 = arith.addf %33, %35 : vector<16x128xf32>
    %cst_18 = arith.constant dense<0.000000e+00> : vector<16xf32>
    %37 = vector.multi_reduction <add>, %36, %cst_18 [1] : vector<16x128xf32> to vector<16xf32>
    %38 = vector.shape_cast %37 : vector<16xf32> to vector<16x1xf32>
    %cst_19 = arith.constant 3.125000e-02 : f32
    %39 = vector.broadcast %cst_19 : f32 to vector<16x1xf32>
    %40 = arith.mulf %38, %39 : vector<16x1xf32>
    %41 = arith.mulf %36, %36 : vector<16x128xf32>
    %cst_20 = arith.constant dense<0.000000e+00> : vector<16xf32>
    %42 = vector.multi_reduction <add>, %41, %cst_20 [1] : vector<16x128xf32> to vector<16xf32>
    %43 = vector.shape_cast %42 : vector<16xf32> to vector<16x1xf32>
    %cst_21 = arith.constant 3.125000e-02 : f32
    %44 = vector.broadcast %cst_21 : f32 to vector<16x1xf32>
    %45 = arith.mulf %43, %44 : vector<16x1xf32>
    %46 = arith.mulf %40, %40 : vector<16x1xf32>
    %47 = arith.subf %45, %46 : vector<16x1xf32>
    %cst_22 = arith.constant 0.000000e+00 : f32
    %48 = vector.broadcast %cst_22 : f32 to vector<16x1xf32>
    %49 = arith.maximumf %47, %48 : vector<16x1xf32>
    %50 = vector.broadcast %40 : vector<16x1xf32> to vector<16x128xf32>
    %51 = arith.subf %36, %50 : vector<16x128xf32>
    %cst_23 = arith.constant 9.99999974E-6 : f32
    %52 = vector.broadcast %cst_23 : f32 to vector<16x1xf32>
    %53 = arith.addf %49, %52 : vector<16x1xf32>
    %54 = math.rsqrt %53 : vector<16x1xf32>
    %55 = vector.broadcast %54 : vector<16x1xf32> to vector<16x128xf32>
    %56 = arith.mulf %51, %55 : vector<16x128xf32>
    %c0_24 = arith.constant 0 : index
    %c0_25 = arith.constant 0 : index
    %57 = vector.load %arg6[%c0_24, %c0_25] : memref<1x128xf32, #tpu.memory_space<vmem>>, vector<1x128xf32>
    %58 = vector.broadcast %57 : vector<1x128xf32> to vector<16x128xf32>
    %59 = arith.mulf %56, %58 : vector<16x128xf32>
    %c0_26 = arith.constant 0 : index
    %c0_27 = arith.constant 0 : index
    %60 = vector.load %arg7[%c0_26, %c0_27] : memref<1x128xf32, #tpu.memory_space<vmem>>, vector<1x128xf32>
    %61 = vector.broadcast %60 : vector<1x128xf32> to vector<16x128xf32>
    %62 = arith.addf %59, %61 : vector<16x128xf32>
    %c0_28 = arith.constant 0 : index
    %c0_29 = arith.constant 0 : index
    %63 = vector.load %arg8[%c0_28, %c0_29] : memref<16x128xf32, #tpu.memory_space<vmem>>, vector<16x128xf32>
    tpu.vector_store %arg8[%c0_28, %c0_29], %62 {strides = array<i32>} : memref<16x128xf32, #tpu.memory_space<vmem>>, vector<16x128xf32>,
    return
  }
  func.func @transform_0(%arg0: i32) -> (i32, i32) {
    %c0_i32 = arith.constant 0 : i32
    %c0_i32_0 = arith.constant 0 : i32
    return %arg0, %c0_i32 : i32, i32
  }
  func.func @transform_1(%arg0: i32) -> (i32, i32) {
    %c0_i32 = arith.constant 0 : i32
    %c0_i32_0 = arith.constant 0 : i32
    %c0_i32_1 = arith.constant 0 : i32
    return %c0_i32, %c0_i32_0 : i32, i32
  }
  func.func @transform_2(%arg0: i32) -> (i32, i32) {
    %c0_i32 = arith.constant 0 : i32
    %c0_i32_0 = arith.constant 0 : i32
    %c0_i32_1 = arith.constant 0 : i32
    return %c0_i32, %c0_i32_0 : i32, i32
  }
  func.func @transform_3(%arg0: i32) -> (i32, i32) {
    %c0_i32 = arith.constant 0 : i32
    %c0_i32_0 = arith.constant 0 : i32
    %c0_i32_1 = arith.constant 0 : i32
    return %c0_i32, %c0_i32_0 : i32, i32
  }
  func.func @transform_4(%arg0: i32) -> (i32, i32) {
    %c0_i32 = arith.constant 0 : i32
    %c0_i32_0 = arith.constant 0 : i32
    %c0_i32_1 = arith.constant 0 : i32
    return %c0_i32, %c0_i32_0 : i32, i32
  }
  func.func @transform_5(%arg0: i32) -> (i32, i32) {
    %c0_i32 = arith.constant 0 : i32
    %c0_i32_0 = arith.constant 0 : i32
    %c0_i32_1 = arith.constant 0 : i32
    return %c0_i32, %c0_i32_0 : i32, i32
  }
  func.func @transform_6(%arg0: i32) -> (i32, i32) {
    %c0_i32 = arith.constant 0 : i32
    %c0_i32_0 = arith.constant 0 : i32
    %c0_i32_1 = arith.constant 0 : i32
    return %c0_i32, %c0_i32_0 : i32, i32
  }
  func.func @transform_7(%arg0: i32) -> (i32, i32) {
    %c0_i32 = arith.constant 0 : i32
    %c0_i32_0 = arith.constant 0 : i32
    return %arg0, %c0_i32 : i32, i32
  }
}

</mosaic_0001>

<bundles_post_ra>
// kernel: tpu_custom_call.1
= control target key start
LH: loop header
LB: loop body
LE: loop exit
PB: predicated region body
PF: predicated region fallthrough
CT: control target
= control target key end

     0   :  { %12 = vsyncpa [#allocation3], 0  ;;  %s567_s0 = inlined_call_operand.hbm [shape: f32[16,32], index: 0, kind: input, shape index: {}]   ;;  %s568_s1 = inlined_call_operand.hbm [shape: bf16[32,64], index: 1, kind: input, shape index: {}]   ;;  %s569_s2 = inlined_call_operand.vmem [shape: f32[1,64], index: 2, kind: input, shape index: {}]   ;;  %s570_s3 = inlined_call_operand.hbm [shape: bf16[64,128], index: 3, kind: input, shape index: {}]   ;;  %s571_s4 = inlined_call_operand.vmem [shape: f32[1,128], index: 4, kind: input, shape index: {}]   ;;  %s572_s5 = inlined_call_operand.vmem [shape: f32[1,128], index: 5, kind: input, shape index: {}]   ;;  %s573_s6 = inlined_call_operand.vmem [shape: f32[1,128], index: 6, kind: input, shape index: {}]   ;;  %s574_s7 = inlined_call_operand.hbm [shape: f32[16,128], index: 7, kind: output, shape index: {}]  }
   0x1   :  { %13 = vsyncpa [#allocation6], 0 }
   0x2   :  { %14 = vsyncpa [#allocation4], 0  ;;  %s482_s24 = smov [#allocation5]  }
   0x3   :  { %s32_s25 = sshll.u32 %s482_s24, 4  ;;  %s33_s25 = int_to_ptr.vmem [resolvable:$true] %s32_s25 }
   0x4   :  { %s404_s26 = scalar_lea.vmem %s33_s25, 256  ;;  %p409_p1 = scmp.lt.s32.totalorder %s33_s25, %s33_s25 }
   0x5   :  { %p405_p0 = scmp.ne.s32.totalorder %s33_s25, %s404_s26  ;;  %p410_p2 = scmp.lt.s32.totalorder %s404_s26, %s404_s26 }
   0x7   :  { %p411_p3 = por %p410_p2, %p409_p1 }
   0x9   :  { %p412_p4 = pnand %p411_p3, %p405_p0 }
   0xb   :  { %415 = shalt.err (!%p412_p4)
}
   0xc   :  { %s483_s27 = smov 64   ;;  %s484_s28 = smov 4  }
   0xd   :  { %38 = dma.hbm_to_vmem [thread:$0]  %s568_s1, 256, %s33_s25, [#allocation6], %s483_s27, %s483_s27, %s484_s28  }
   0xe   :  { %s485_s8 = smov [#allocation2]  }
   0xf   :  { %s20_s9 = sshll.u32 %s485_s8, 4  ;;  %s21_s9 = int_to_ptr.vmem [resolvable:$true] %s20_s9 }
  0x10   :  { %s424_s10 = scalar_lea.vmem %s21_s9, 256  ;;  %p429_p6 = scmp.lt.s32.totalorder %s21_s9, %s21_s9 }
  0x11   :  { %p425_p5 = scmp.ne.s32.totalorder %s21_s9, %s424_s10  ;;  %p430_p7 = scmp.lt.s32.totalorder %s424_s10, %s424_s10 }
  0x13   :  { %p431_p8 = por %p430_p7, %p429_p6 }
  0x15   :  { %p432_p9 = pnand %p431_p8, %p425_p5 }
  0x17   :  { %435 = shalt.err (!%p432_p9)
}
  0x18   :  { %s486_s11 = smov 128   ;;  %s487_s12 = smov 8  }
  0x19   :  { %26 = dma.hbm_to_vmem [thread:$0]  %s567_s0, 256, %s21_s9, [#allocation3], %s486_s11, %s486_s11, %s487_s12  }
  0x1a   :  { %s488_s1 = smov [#allocation7]  }
  0x1b   :  { %s46_s15 = sshll.u32 %s488_s1, 4  ;;  %s47_s15 = int_to_ptr.vmem [resolvable:$true] %s46_s15 }
  0x1c   :  { %s444_s16 = scalar_lea.vmem %s47_s15, 512  ;;  %p449_p11 = scmp.lt.s32.totalorder %s47_s15, %s47_s15 }
  0x1d   :  { %p445_p10 = scmp.ne.s32.totalorder %s47_s15, %s444_s16  ;;  %p450_p12 = scmp.lt.s32.totalorder %s444_s16, %s444_s16 }
  0x1f   :  { %p451_p13 = por %p450_p12, %p449_p11 }
  0x21   :  { %p452_p0 = pnand %p451_p13, %p445_p10 }
  0x23   :  { %455 = shalt.err (!%p452_p0)
}
  0x24   :  { %52 = dma.hbm_to_vmem [thread:$0]  %s570_s3, 512, %s47_s15, [#allocation6], %s483_s27, %s483_s27, %s484_s28  }
  0x25   :  { %476 = dma.done.wait [#allocation3], 256  }
  0x26   :  { %477 = vsyncadd [#allocation3], 4294967040 }
  0x27   :  { %478 = dma.done.wait [#allocation6], 768  }
  0x28   :  { %479 = vsyncadd [#allocation6], 4294966528  ;;  %vm71_vm0 = vcmask 261120   ;;  %v69_v0 = vld [vmem:[#allocation2] sm:$0xff]  ;;  %v70_v1 = vld [vmem:[#allocation2 + $0x8] sm:$0xff]  ;;  %v489_v15 = vmov 0.0  }
  0x29   :  { %v72_v2 = vsel %vm71_vm0, %v69_v0, 0.0  ;;  %v75_v3 = vsel %vm71_vm0, %v70_v1, 0.0  ;;  %v378_v14 = vld [vmem:[#allocation5 + $0x8] sm:$0xff]   ;;  %348 = vmatprep.subr.bf16.mxu0 %v489_v15  ;;  %vm490_vm1 = vmmov 0   ;;  %v379_v16 = vld [vmem:[#allocation5] sm:$0xff]   ;;  %356 = vmatprep.subr.bf16.mxu1 %v489_v15  ;;  %v382_v30 = vld [vmem:[#allocation7 + $0x8] sm:$0xff]  }
  0x2a   :  { %73 = vadd.xlane.f32.xlu0 %v72_v2  ;;  %352 = vmatprep.mubr.msk.bf16.mxu0 %vm490_vm1, %v489_v15  ;;  %v380_v28 = vld [vmem:[#allocation7 + $0x18] sm:$0xff]   ;;  %v381_v29 = vld [vmem:[#allocation7 + $0x10] sm:$0xff]   ;;  %v383_v31 = vld [vmem:[#allocation7] sm:$0xff]   ;;  %vm217_vm2 = vcmask 523264   ;;  %s491_s23 = smov [#allocation8]  }
  0x2b   :  { %349 = vmatpush3.bf16.msra.mxu0 %v378_v14  ;;  %364 = vmatprep.mubr.msk.bf16.mxu1 %vm490_vm1, %v489_v15  ;;  %v328_v32 = vld [vmem:[%s569_s2] ss:$0 sm:$0xff]  ;;  %s315_s24 = sshll.u32 %s491_s23, 4  ;;  %s316_s24 = int_to_ptr.vmem [resolvable:$true] %s315_s24 }
  0x2c   :  { %350 = vmatprep.subr.bf16.mxu0 %v489_v15  ;;  %357 = vmatpush3.bf16.msra.mxu1 %v380_v28  ;;  %v332_v50 = vld [vmem:[%s571_s4] ss:$0 sm:$0xff]  ;;  %s456_s25 = scalar_lea.vmem %s316_s24, 256  ;;  %p461_p2 = scmp.lt.s32.totalorder %s316_s24, %s316_s24 }
  0x2d   :  { %358 = vmatprep.subr.bf16.mxu1 %v489_v15  ;;  %p457_p1 = scmp.ne.s32.totalorder %s316_s24, %s456_s25  ;;  %p462_p3 = scmp.lt.s32.totalorder %s456_s25, %s456_s25 }
  0x2e   :  { %76 = vadd.xlane.f32.xlu0 %v75_v3 }
  0x2f   :  { %351 = vmatpush3.bf16.msra.mxu0 %v379_v16  ;;  %p463_p4 = por %p462_p3, %p461_p2 }
  0x30   :  { %359 = vmatpush3.bf16.msra.mxu1 %v381_v29 }
  0x31   :  { %360 = vmatprep.subr.bf16.mxu1 %v489_v15  ;;  %p464_p5 = pnand %p463_p4, %p457_p1 }
  0x34   :  { %361 = vmatpush3.bf16.msra.mxu1 %v382_v30 }
  0x35   :  { %362 = vmatprep.subr.bf16.mxu1 %v489_v15  ;;  %v339_v15 = vld [vmem:[%s573_s6] ss:$0 sm:$0xff] }
  0x38   :  { %363 = vmatpush3.bf16.msra.mxu1 %v383_v31 }
  0xb3   :  { %v74_v4 = vpop.xlane.xlu0 %73 }
  0xb4   :  { %v79_v5 = vmul.f32 0.03125, %v74_v4 }
  0xb6   :  { %v81_v6 = vsub.f32 %v69_v0, %v79_v5 }
  0xb7   :  { %v77_v7 = vpop.xlane.xlu0 %76 }
  0xb8   :  { %v80_v8 = vmul.f32 0.03125, %v77_v7  ;;  %v83_v9 = vmul.f32 %v81_v6, %v81_v6 }
  0xba   :  { %v82_v10 = vsub.f32 %v70_v1, %v80_v8  ;;  %v85_v11 = vsel %vm71_vm0, %v83_v9, 0.0 }
  0xbb   :  { %86 = vadd.xlane.f32.xlu1 %v85_v11 }
  0xbc   :  { %v84_v12 = vmul.f32 %v82_v10, %v82_v10 }
  0xbe   :  { %v88_v13 = vsel %vm71_vm0, %v84_v12, 0.0 }
  0xbf   :  { %89 = vadd.xlane.f32.xlu1 %v88_v13  ;;  %v338_v13 = vld [vmem:[%s572_s5] ss:$0 sm:$0xff] }
 0x144   :  { %v87_v17 = vpop.xlane.xlu1 %86 }
 0x145   :  { %v91_v18 = vmul.f32 0.03125, %v87_v17 }
 0x147   :  { %v93_v19 = vadd.f32 1e-05, %v91_v18 }
 0x148   :  { %v90_v20 = vpop.xlane.xlu1 %89 }
 0x149   :  { %v92_v21 = vmul.f32 0.03125, %v90_v20  ;;  %384 = vrsqrt.f32 %v93_v19 }
 0x14b   :  { %v94_v22 = vadd.f32 1e-05, %v92_v21 }
 0x14d   :  { %386 = vrsqrt.f32 %v94_v22 }
 0x156   :  { %v385_v23 = vpop.eup %384 }
 0x157   :  { %v97_v25 = vmul.f32 %v385_v23, %v81_v6 }
 0x15a   :  { %v387_v24 = vpop.eup %386 }
 0x15b   :  { %v98_v26 = vmul.f32 %v387_v24, %v82_v10 }
 0x15d   :  { %v99_v27 = vpack.c.bf16 %v98_v26, %v97_v25 }
 0x15f   :  { %353 = vmatmul.mubr.msk.bf16.vlgmr.msra.gmra.mxu0 %vm71_vm0, %v99_v27 }
 0x21f   :  { %v160_v33 = vpop.f32.mrf.mxu0 }
 0x220   :  { %v161_v34 = vadd.f32 %v328_v32, %v160_v33 }
 0x221   :  { %v354_v35 = vpop.f32.mrf.mxu0 }
 0x222   :  { %v167_v36 = vmul.f32 0.70710677, %v161_v34  ;;  %v171_v44 = vmul.f32 0.5, %v161_v34 }
 0x223   :  { %v163_v37 = vpop.f32.mrf.mxu0 }
 0x224   :  { %388 = verf.f32 %v167_v36  ;;  %v164_v38 = vadd.f32 %v328_v32, %v163_v37 }
 0x225   :  { %v355_v39 = vpop.f32.mrf.mxu0 }
 0x226   :  { %v168_v40 = vmul.f32 0.70710677, %v164_v38  ;;  %v172_v45 = vmul.f32 0.5, %v164_v38 }
 0x228   :  { %390 = verf.f32 %v168_v40 }
 0x231   :  { %v389_v41 = vpop.eup %388 }
 0x232   :  { %v173_v42 = vadd.f32 1.0, %v389_v41 }
 0x234   :  { %v175_v47 = vmul.f32 %v173_v42, %v171_v44 }
 0x235   :  { %v391_v43 = vpop.eup %390 }
 0x236   :  { %v174_v46 = vadd.f32 1.0, %v391_v43 }
 0x238   :  { %v176_v48 = vmul.f32 %v174_v46, %v172_v45 }
 0x23a   :  { %v177_v49 = vpack.c.bf16 %v176_v48, %v175_v47 }
 0x23c   :  { %365 = vmatmul.mubr.msk.bf16.vlgmr.msra.gmra.mxu1 %vm217_vm2, %v177_v49 }
 0x2fc   :  { %v255_v51 = vpop.f32.mrf.mxu1 }
 0x2fd   :  { %v256_v52 = vadd.f32 %v332_v50, %v255_v51 }
 0x2fe   :  { %v366_v53 = vpop.f32.mrf.mxu1 }
 0x2ff   :  { %262 = vadd.xlane.f32.xlu0 %v256_v52  ;;  %v268_v56 = vmul.f32 %v256_v52, %v256_v52 }
 0x300   :  { %v258_v54 = vpop.f32.mrf.mxu1 }
 0x301   :  { %v259_v55 = vadd.f32 %v332_v50, %v258_v54 }
 0x302   :  { %v367_v57 = vpop.f32.mrf.mxu1 }
 0x303   :  { %270 = vadd.xlane.f32.xlu0 %v268_v56  ;;  %264 = vadd.xlane.f32.xlu1 %v259_v55  ;;  %v269_v58 = vmul.f32 %v259_v55, %v259_v55 }
 0x307   :  { %272 = vadd.xlane.f32.xlu1 %v269_v58 }
 0x388   :  { %v263_v59 = vpop.xlane.xlu0 %262 }
 0x389   :  { %v266_v60 = vmul.f32 0.03125, %v263_v59 }
 0x38b   :  { %v276_v63 = vmul.f32 %v266_v60, %v266_v60  ;;  %v282_v11 = vsub.f32 %v256_v52, %v266_v60 }
 0x38c   :  { %v271_v61 = vpop.xlane.xlu0 %270  ;;  %v265_v62 = vpop.xlane.xlu1 %264 }
 0x38d   :  { %v274_v0 = vmul.f32 0.03125, %v271_v61  ;;  %v267_v1 = vmul.f32 0.03125, %v265_v62 }
 0x38f   :  { %v278_v2 = vsub.f32 %v274_v0, %v276_v63  ;;  %v277_v5 = vmul.f32 %v267_v1, %v267_v1  ;;  %v283_v16 = vsub.f32 %v259_v55, %v267_v1 }
 0x390   :  { %v273_v3 = vpop.xlane.xlu1 %272 }
 0x391   :  { %v280_v4 = vmax.f32 %v278_v2, 0.0  ;;  %v275_v6 = vmul.f32 0.03125, %v273_v3 }
 0x393   :  { %v284_v7 = vadd.f32 1e-05, %v280_v4  ;;  %v279_v8 = vsub.f32 %v275_v6, %v277_v5 }
 0x395   :  { %392 = vrsqrt.f32 %v284_v7  ;;  %v281_v9 = vmax.f32 %v279_v8, 0.0 }
 0x397   :  { %v285_v10 = vadd.f32 1e-05, %v281_v9 }
 0x399   :  { %394 = vrsqrt.f32 %v285_v10 }
 0x3a2   :  { %v393_v12 = vpop.eup %392 }
 0x3a3   :  { %v288_v14 = vmul.f32 %v393_v12, %v282_v11 }
 0x3a5   :  { %v297_v17 = vmul.f32 %v338_v13, %v288_v14 }
 0x3a6   :  { %v395_v18 = vpop.eup %394 }
 0x3a7   :  { %v289_v19 = vmul.f32 %v395_v18, %v283_v16  ;;  %v306_v20 = vadd.f32 %v339_v15, %v297_v17 }
 0x3a9   :  { %v298_v21 = vmul.f32 %v338_v13, %v289_v19  ;;  %308 = vst [vmem:[#allocation8] sm:$0xff] %v306_v20 }
 0x3ab   :  { %v307_v22 = vadd.f32 %v339_v15, %v298_v21 }
 0x3ad   :  { %309 = vst [vmem:[#allocation8 + $0x8] sm:$0xff] %v307_v22 }
 0x3ae   :  { %467 = shalt.err (!%p464_p5)
}
 0x3af   :  { %321 = dma.vmem_to_hbm [thread:$0]  %s316_s24, 256, %s574_s7, [#allocation4], %s486_s11, %s486_s11, %s487_s12  }
 0x3b0   :  { %480 = dma.done.wait [#allocation4], 256  }
 0x3b1   :  { %481 = vsyncadd [#allocation4], 4294967040 }
 0x3b2   :  { %325 = vsyncpa [#allocation3], 1 }
 0x3b3   :  { %326 = vsyncpa [#allocation6], 1 }
 0x3b4   :  { %327 = vsyncpa [#allocation4], 1 }

// kernel: tpu_custom_call.1
= control target key start
LH: loop header
LB: loop body
LE: loop exit
PB: predicated region body
PF: predicated region fallthrough
CT: control target
= control target key end

     0   :  { %12 = vsyncpa [#allocation3], 0  ;;  %s567_s0 = inlined_call_operand.hbm [shape: f32[16,32], index: 0, kind: input, shape index: {}]   ;;  %s568_s1 = inlined_call_operand.hbm [shape: bf16[32,64], index: 1, kind: input, shape index: {}]   ;;  %s569_s2 = inlined_call_operand.vmem [shape: f32[1,64], index: 2, kind: input, shape index: {}]   ;;  %s570_s3 = inlined_call_operand.hbm [shape: bf16[64,128], index: 3, kind: input, shape index: {}]   ;;  %s571_s4 = inlined_call_operand.vmem [shape: f32[1,128], index: 4, kind: input, shape index: {}]   ;;  %s572_s5 = inlined_call_operand.vmem [shape: f32[1,128], index: 5, kind: input, shape index: {}]   ;;  %s573_s6 = inlined_call_operand.vmem [shape: f32[1,128], index: 6, kind: input, shape index: {}]   ;;  %s574_s7 = inlined_call_operand.hbm [shape: f32[16,128], index: 7, kind: output, shape index: {}]  }
   0x1   :  { %13 = vsyncpa [#allocation6], 0 }
   0x2   :  { %14 = vsyncpa [#allocation4], 0  ;;  %s482_s24 = smov [#allocation5]  }
   0x3   :  { %s32_s25 = sshll.u32 %s482_s24, 4  ;;  %s33_s25 = int_to_ptr.vmem [resolvable:$true] %s32_s25 }
   0x4   :  { %s404_s26 = scalar_lea.vmem %s33_s25, 256  ;;  %p409_p1 = scmp.lt.s32.totalorder %s33_s25, %s33_s25 }
   0x5   :  { %p405_p0 = scmp.ne.s32.totalorder %s33_s25, %s404_s26  ;;  %p410_p2 = scmp.lt.s32.totalorder %s404_s26, %s404_s26 }
   0x7   :  { %p411_p3 = por %p410_p2, %p409_p1 }
   0x9   :  { %p412_p4 = pnand %p411_p3, %p405_p0 }
   0xb   :  { %415 = shalt.err (!%p412_p4)
}
   0xc   :  { %s483_s27 = smov 64   ;;  %s484_s28 = smov 4  }
   0xd   :  { %38 = dma.hbm_to_vmem [thread:$0]  %s568_s1, 256, %s33_s25, [#allocation6], %s483_s27, %s483_s27, %s484_s28  }
   0xe   :  { %s485_s8 = smov [#allocation2]  }
   0xf   :  { %s20_s9 = sshll.u32 %s485_s8, 4  ;;  %s21_s9 = int_to_ptr.vmem [resolvable:$true] %s20_s9 }
  0x10   :  { %s424_s10 = scalar_lea.vmem %s21_s9, 256  ;;  %p429_p6 = scmp.lt.s32.totalorder %s21_s9, %s21_s9 }
  0x11   :  { %p425_p5 = scmp.ne.s32.totalorder %s21_s9, %s424_s10  ;;  %p430_p7 = scmp.lt.s32.totalorder %s424_s10, %s424_s10 }
  0x13   :  { %p431_p8 = por %p430_p7, %p429_p6 }
  0x15   :  { %p432_p9 = pnand %p431_p8, %p425_p5 }
  0x17   :  { %435 = shalt.err (!%p432_p9)
}
  0x18   :  { %s486_s11 = smov 128   ;;  %s487_s12 = smov 8  }
  0x19   :  { %26 = dma.hbm_to_vmem [thread:$0]  %s567_s0, 256, %s21_s9, [#allocation3], %s486_s11, %s486_s11, %s487_s12  }
  0x1a   :  { %s488_s1 = smov [#allocation7]  }
  0x1b   :  { %s46_s15 = sshll.u32 %s488_s1, 4  ;;  %s47_s15 = int_to_ptr.vmem [resolvable:$true] %s46_s15 }
  0x1c   :  { %s444_s16 = scalar_lea.vmem %s47_s15, 512  ;;  %p449_p11 = scmp.lt.s32.totalorder %s47_s15, %s47_s15 }
  0x1d   :  { %p445_p10 = scmp.ne.s32.totalorder %s47_s15, %s444_s16  ;;  %p450_p12 = scmp.lt.s32.totalorder %s444_s16, %s444_s16 }
  0x1f   :  { %p451_p13 = por %p450_p12, %p449_p11 }
  0x21   :  { %p452_p0 = pnand %p451_p13, %p445_p10 }
  0x23   :  { %455 = shalt.err (!%p452_p0)
}
  0x24   :  { %52 = dma.hbm_to_vmem [thread:$0]  %s570_s3, 512, %s47_s15, [#allocation6], %s483_s27, %s483_s27, %s484_s28  }
  0x25   :  { %476 = dma.done.wait [#allocation3], 256  }
  0x26   :  { %477 = vsyncadd [#allocation3], 4294967040 }
  0x27   :  { %478 = dma.done.wait [#allocation6], 768  }
  0x28   :  { %479 = vsyncadd [#allocation6], 4294966528  ;;  %vm71_vm0 = vcmask 261120   ;;  %v69_v0 = vld [vmem:[#allocation2] sm:$0xff]  ;;  %v70_v1 = vld [vmem:[#allocation2 + $0x8] sm:$0xff]  ;;  %v489_v15 = vmov 0.0  }
  0x29   :  { %v72_v2 = vsel %vm71_vm0, %v69_v0, 0.0  ;;  %v75_v3 = vsel %vm71_vm0, %v70_v1, 0.0  ;;  %v378_v14 = vld [vmem:[#allocation5 + $0x8] sm:$0xff]   ;;  %348 = vmatprep.subr.bf16.mxu0 %v489_v15  ;;  %vm490_vm1 = vmmov 0   ;;  %v379_v16 = vld [vmem:[#allocation5] sm:$0xff]   ;;  %356 = vmatprep.subr.bf16.mxu1 %v489_v15  ;;  %v382_v30 = vld [vmem:[#allocation7 + $0x8] sm:$0xff]  }
  0x2a   :  { %73 = vadd.xlane.f32.xlu0 %v72_v2  ;;  %352 = vmatprep.mubr.msk.bf16.mxu0 %vm490_vm1, %v489_v15  ;;  %v380_v28 = vld [vmem:[#allocation7 + $0x18] sm:$0xff]   ;;  %v381_v29 = vld [vmem:[#allocation7 + $0x10] sm:$0xff]   ;;  %v383_v31 = vld [vmem:[#allocation7] sm:$0xff]   ;;  %vm217_vm2 = vcmask 523264   ;;  %s491_s23 = smov [#allocation8]  }
  0x2b   :  { %349 = vmatpush3.bf16.msra.mxu0 %v378_v14  ;;  %364 = vmatprep.mubr.msk.bf16.mxu1 %vm490_vm1, %v489_v15  ;;  %v328_v32 = vld [vmem:[%s569_s2] ss:$0 sm:$0xff]  ;;  %s315_s24 = sshll.u32 %s491_s23, 4  ;;  %s316_s24 = int_to_ptr.vmem [resolvable:$true] %s315_s24 }
  0x2c   :  { %350 = vmatprep.subr.bf16.mxu0 %v489_v15  ;;  %357 = vmatpush3.bf16.msra.mxu1 %v380_v28  ;;  %v332_v50 = vld [vmem:[%s571_s4] ss:$0 sm:$0xff]  ;;  %s456_s25 = scalar_lea.vmem %s316_s24, 256  ;;  %p461_p2 = scmp.lt.s32.totalorder %s316_s24, %s316_s24 }
  0x2d   :  { %358 = vmatprep.subr.bf16.mxu1 %v489_v15  ;;  %p457_p1 = scmp.ne.s32.totalorder %s316_s24, %s456_s25  ;;  %p462_p3 = scmp.lt.s32.totalorder %s456_s25, %s456_s25 }
  0x2e   :  { %76 = vadd.xlane.f32.xlu0 %v75_v3 }
  0x2f   :  { %351 = vmatpush3.bf16.msra.mxu0 %v379_v16  ;;  %p463_p4 = por %p462_p3, %p461_p2 }
  0x30   :  { %359 = vmatpush3.bf16.msra.mxu1 %v381_v29 }
  0x31   :  { %360 = vmatprep.subr.bf16.mxu1 %v489_v15  ;;  %p464_p5 = pnand %p463_p4, %p457_p1 }
  0x34   :  { %361 = vmatpush3.bf16.msra.mxu1 %v382_v30 }
  0x35   :  { %362 = vmatprep.subr.bf16.mxu1 %v489_v15  ;;  %v339_v15 = vld [vmem:[%s573_s6] ss:$0 sm:$0xff] }
  0x38   :  { %363 = vmatpush3.bf16.msra.mxu1 %v383_v31 }
  0xb3   :  { %v74_v4 = vpop.xlane.xlu0 %73 }
  0xb4   :  { %v79_v5 = vmul.f32 0.03125, %v74_v4 }
  0xb6   :  { %v81_v6 = vsub.f32 %v69_v0, %v79_v5 }
  0xb7   :  { %v77_v7 = vpop.xlane.xlu0 %76 }
  0xb8   :  { %v80_v8 = vmul.f32 0.03125, %v77_v7  ;;  %v83_v9 = vmul.f32 %v81_v6, %v81_v6 }
  0xba   :  { %v82_v10 = vsub.f32 %v70_v1, %v80_v8  ;;  %v85_v11 = vsel %vm71_vm0, %v83_v9, 0.0 }
  0xbb   :  { %86 = vadd.xlane.f32.xlu1 %v85_v11 }
  0xbc   :  { %v84_v12 = vmul.f32 %v82_v10, %v82_v10 }
  0xbe   :  { %v88_v13 = vsel %vm71_vm0, %v84_v12, 0.0 }
  0xbf   :  { %89 = vadd.xlane.f32.xlu1 %v88_v13  ;;  %v338_v13 = vld [vmem:[%s572_s5] ss:$0 sm:$0xff] }
 0x144   :  { %v87_v17 = vpop.xlane.xlu1 %86 }
 0x145   :  { %v91_v18 = vmul.f32 0.03125, %v87_v17 }
 0x147   :  { %v93_v19 = vadd.f32 1e-05, %v91_v18 }
 0x148   :  { %v90_v20 = vpop.xlane.xlu1 %89 }
 0x149   :  { %v92_v21 = vmul.f32 0.03125, %v90_v20  ;;  %384 = vrsqrt.f32 %v93_v19 }
 0x14b   :  { %v94_v22 = vadd.f32 1e-05, %v92_v21 }
 0x14d   :  { %386 = vrsqrt.f32 %v94_v22 }
 0x156   :  { %v385_v23 = vpop.eup %384 }
 0x157   :  { %v97_v25 = vmul.f32 %v385_v23, %v81_v6 }
 0x15a   :  { %v387_v24 = vpop.eup %386 }
 0x15b   :  { %v98_v26 = vmul.f32 %v387_v24, %v82_v10 }
 0x15d   :  { %v99_v27 = vpack.c.bf16 %v98_v26, %v97_v25 }
 0x15f   :  { %353 = vmatmul.mubr.msk.bf16.vlgmr.msra.gmra.mxu0 %vm71_vm0, %v99_v27 }
 0x21f   :  { %v160_v33 = vpop.f32.mrf.mxu0 }
 0x220   :  { %v161_v34 = vadd.f32 %v328_v32, %v160_v33 }
 0x221   :  { %v354_v35 = vpop.f32.mrf.mxu0 }
 0x222   :  { %v167_v36 = vmul.f32 0.70710677, %v161_v34  ;;  %v171_v44 = vmul.f32 0.5, %v161_v34 }
 0x223   :  { %v163_v37 = vpop.f32.mrf.mxu0 }
 0x224   :  { %388 = verf.f32 %v167_v36  ;;  %v164_v38 = vadd.f32 %v328_v32, %v163_v37 }
 0x225   :  { %v355_v39 = vpop.f32.mrf.mxu0 }
 0x226   :  { %v168_v40 = vmul.f32 0.70710677, %v164_v38  ;;  %v172_v45 = vmul.f32 0.5, %v164_v38 }
 0x228   :  { %390 = verf.f32 %v168_v40 }
 0x231   :  { %v389_v41 = vpop.eup %388 }
 0x232   :  { %v173_v42 = vadd.f32 1.0, %v389_v41 }
 0x234   :  { %v175_v47 = vmul.f32 %v173_v42, %v171_v44 }
 0x235   :  { %v391_v43 = vpop.eup %390 }
 0x236   :  { %v174_v46 = vadd.f32 1.0, %v391_v43 }
 0x238   :  { %v176_v48 = vmul.f32 %v174_v46, %v172_v45 }
 0x23a   :  { %v177_v49 = vpack.c.bf16 %v176_v48, %v175_v47 }
 0x23c   :  { %365 = vmatmul.mubr.msk.bf16.vlgmr.msra.gmra.mxu1 %vm217_vm2, %v177_v49 }
 0x2fc   :  { %v255_v51 = vpop.f32.mrf.mxu1 }
 0x2fd   :  { %v256_v52 = vadd.f32 %v332_v50, %v255_v51 }
 0x2fe   :  { %v366_v53 = vpop.f32.mrf.mxu1 }
 0x2ff   :  { %262 = vadd.xlane.f32.xlu0 %v256_v52  ;;  %v268_v56 = vmul.f32 %v256_v52, %v256_v52 }
 0x300   :  { %v258_v54 = vpop.f32.mrf.mxu1 }
 0x301   :  { %v259_v55 = vadd.f32 %v332_v50, %v258_v54 }
 0x302   :  { %v367_v57 = vpop.f32.mrf.mxu1 }
 0x303   :  { %270 = vadd.xlane.f32.xlu0 %v268_v56  ;;  %264 = vadd.xlane.f32.xlu1 %v259_v55  ;;  %v269_v58 = vmul.f32 %v259_v55, %v259_v55 }
 0x307   :  { %272 = vadd.xlane.f32.xlu1 %v269_v58 }
 0x388   :  { %v263_v59 = vpop.xlane.xlu0 %262 }
 0x389   :  { %v266_v60 = vmul.f32 0.03125, %v263_v59 }
 0x38b   :  { %v276_v63 = vmul.f32 %v266_v60, %v266_v60  ;;  %v282_v11 = vsub.f32 %v256_v52, %v266_v60 }
 0x38c   :  { %v271_v61 = vpop.xlane.xlu0 %270  ;;  %v265_v62 = vpop.xlane.xlu1 %264 }
 0x38d   :  { %v274_v0 = vmul.f32 0.03125, %v271_v61  ;;  %v267_v1 = vmul.f32 0.03125, %v265_v62 }
 0x38f   :  { %v278_v2 = vsub.f32 %v274_v0, %v276_v63  ;;  %v277_v5 = vmul.f32 %v267_v1, %v267_v1  ;;  %v283_v16 = vsub.f32 %v259_v55, %v267_v1 }
 0x390   :  { %v273_v3 = vpop.xlane.xlu1 %272 }
 0x391   :  { %v280_v4 = vmax.f32 %v278_v2, 0.0  ;;  %v275_v6 = vmul.f32 0.03125, %v273_v3 }
 0x393   :  { %v284_v7 = vadd.f32 1e-05, %v280_v4  ;;  %v279_v8 = vsub.f32 %v275_v6, %v277_v5 }
 0x395   :  { %392 = vrsqrt.f32 %v284_v7  ;;  %v281_v9 = vmax.f32 %v279_v8, 0.0 }
 0x397   :  { %v285_v10 = vadd.f32 1e-05, %v281_v9 }
 0x399   :  { %394 = vrsqrt.f32 %v285_v10 }
 0x3a2   :  { %v393_v12 = vpop.eup %392 }
 0x3a3   :  { %v288_v14 = vmul.f32 %v393_v12, %v282_v11 }
 0x3a5   :  { %v297_v17 = vmul.f32 %v338_v13, %v288_v14 }
 0x3a6   :  { %v395_v18 = vpop.eup %394 }
 0x3a7   :  { %v289_v19 = vmul.f32 %v395_v18, %v283_v16  ;;  %v306_v20 = vadd.f32 %v339_v15, %v297_v17 }
 0x3a9   :  { %v298_v21 = vmul.f32 %v338_v13, %v289_v19  ;;  %308 = vst [vmem:[#allocation8] sm:$0xff] %v306_v20 }
 0x3ab   :  { %v307_v22 = vadd.f32 %v339_v15, %v298_v21 }
 0x3ad   :  { %309 = vst [vmem:[#allocation8 + $0x8] sm:$0xff] %v307_v22 }
 0x3ae   :  { %467 = shalt.err (!%p464_p5)
}
 0x3af   :  { %321 = dma.vmem_to_hbm [thread:$0]  %s316_s24, 256, %s574_s7, [#allocation4], %s486_s11, %s486_s11, %s487_s12  }
 0x3b0   :  { %480 = dma.done.wait [#allocation4], 256  }
 0x3b1   :  { %481 = vsyncadd [#allocation4], 4294967040 }
 0x3b2   :  { %325 = vsyncpa [#allocation3], 1 }
 0x3b3   :  { %326 = vsyncpa [#allocation6], 1 }
 0x3b4   :  { %327 = vsyncpa [#allocation4], 1 }

</bundles_post_ra>
